<compile_context>
chip_gen: v7x
topology: tpu7x:2x2x1
jax: 0.10.0
libtpu: 0.0.40
codegen_flags: <defaults>
</compile_context>

<pallas_src>
import numpy as np
import jax
import jax.numpy as jnp
from jax.experimental import pallas as pl
from jax.experimental.pallas import tpu as pltpu


def _pad8(n):
    return -(-n // 8) * 8


def _pad128(n):
    return -(-n // 128) * 128


def _make_freq_bands(N_freqs, logscale):
    # Mirrors torch.linspace semantics (inclusive endpoints), computed in f32.
    if logscale:
        return (2.0 ** np.linspace(0.0, N_freqs - 1, N_freqs)).astype(np.float32)
    return np.linspace(1.0, 2.0 ** (N_freqs - 1), N_freqs, dtype=np.float32)


def _vmem_params():
    """(working-set budget, vmem_limit_bytes), gated by TPU generation."""
    budget, limit = 16 << 20, 48 << 20            # safe for v7x's 64 MiB physical VMEM
    try:
        if pltpu.get_tpu_info().vmem_capacity_bytes >= (100 << 20):  # v5e / v6e (128 MiB)
            budget, limit = 28 << 20, 64 << 20
    except Exception:
        pass
    return budget, limit


def _choose_tile_b(B, C, out_channels, out_itemsize, budget):
    """Pick the batch tile (multiple of 128) from a VMEM budget.

    VMEM lane-pads the narrow last dims of the I/O blocks to 128, so a
    (tile_b, 3) block still costs tile_b*128*4 bytes; account for that, for
    double buffering, the lane-padded transpose staging scratch, and spill
    headroom for the transposed tile, plus the channel-major temporaries.
    """
    n_pack = max(1, (out_channels - C) // 2)       # N_freqs * C
    per_row = (2 * _pad128(C) * 4                  # input block, double buffered
               + _pad128(C) * 4                    # lane-padded transpose staging scratch
               + 2 * _pad128(out_channels) * max(out_itemsize, 2)   # output block x2
               + _pad128(out_channels) * 4)        # transposed f32 tile (spill headroom)
    per_row += (_pad8(out_channels) + 3 * _pad8(n_pack)) * 4        # channel-major temps

    t = max(budget // per_row, 128)
    t = (t // 128) * 128
    t = min(t, 8192)
    n128 = -(-B // 128)
    if n128 >= 2:                                  # keep >=2 grid steps: v7x megacore sharding
        t = min(t, 128 * (-(-n128 // 2)))
    return max(t, 128)


def _make_kernel(freq_bands, C, out_channels):
    """Kernel closed over the static frequency bands (compile-time constants)."""
    freqs = [float(f) for f in freq_bands]
    n_freqs = len(freqs)

    def kernel(x_ref, o_ref, xpad_ref, args_ref, tile_ref):
        # x_ref:    (tile_b, C)                    batch-major input block
        # o_ref:    (tile_b, out_channels)         batch-major output block
        # xpad_ref: (tile_b, lane_target)          lane-padded staging for input transpose
        # args_ref: (pad8(N_freqs*C), tile_b)      packed sin/cos arguments (channel-major)
        # tile_ref: (pad8(out_channels), tile_b)   assembled output tile (channel-major)

        # ---- input -> channel-major (batch on the 128-wide lane axis) -------------
        # Stage through a lane-padded scratch so the transpose operand is fully
        # (8,128)-aligned; the pad lanes are never read after the row slice below.
        xpad_ref[:, :C] = x_ref[...].astype(jnp.float32)
        xt = jnp.transpose(xpad_ref[...])[:C, :]              # (C, tile_b), XLU

        # ---- identity part of the embedding ---------------------------------------
        tile_ref[0:C, :] = xt

        if n_freqs:
            # ---- pack the frequency axis onto sublanes ----------------------------
            for k, f in enumerate(freqs):                      # static unroll, const splats
                args_ref[k * C:(k + 1) * C, :] = f * xt        # VPU
            args = args_ref[...]
            s = jnp.sin(args)                                  # ONE EUP pass, all bands
            c = jnp.cos(args)                                  # ONE EUP pass, all bands

            # ---- interleave to the exact PyTorch ordering, still channel-major ----
            for k in range(n_freqs):
                base = C * (1 + 2 * k)
                tile_ref[base:base + C, :] = s[k * C:(k + 1) * C, :]
                tile_ref[base + C:base + 2 * C, :] = c[k * C:(k + 1) * C, :]

        # ---- single in-kernel transpose (XLU) to the final (B, out) layout --------
        out_bt = jnp.transpose(tile_ref[...])                  # (tile_b, pad8(out_ch))
        o_ref[...] = out_bt[:, :out_channels].astype(o_ref.dtype)

    return kernel


def embedding_forward(x, N_freqs, logscale=False, out_dtype=None, tile_b=None):
    """Drop-in forward matching the PyTorch module.

    x: (B, in_channels). Returns (B, in_channels * (2 * N_freqs + 1)).
    out_dtype=jnp.bfloat16 halves the HBM write bytes if the consumer allows it.
    """
    B, C = x.shape
    out_channels = C * (2 * N_freqs + 1)
    out_dtype = jnp.dtype(x.dtype if out_dtype is None else out_dtype)
    freq_bands = _make_freq_bands(N_freqs, logscale)
    budget, vmem_limit = _vmem_params()

    # Tiny batches: pad up to one 128-row tile so every in-kernel transpose stays
    # (8,128)-aligned.  (For B >= 128, Pallas masks the partial last block.)
    pad_b = (128 - B) if B < 128 else 0
    xk = jnp.pad(x, ((0, pad_b), (0, 0))) if pad_b else x
    Bp = B + pad_b

    if tile_b is None:
        tile_b = _choose_tile_b(Bp, C, out_channels, out_dtype.itemsize, budget)
    tile_b = min(int(tile_b), Bp)
    tile_b = max(128, (tile_b // 128) * 128)
    grid = (pl.cdiv(Bp, tile_b),)

    lane_target = max(128, _pad128(C))
    pack_rows = _pad8(max(N_freqs * C, 1))
    out_rows = _pad8(out_channels)

    kernel = _make_kernel(freq_bands, C, out_channels)

    out = pl.pallas_call(
        kernel,
        out_shape=jax.ShapeDtypeStruct((Bp, out_channels), out_dtype),
        grid=grid,
        in_specs=[pl.BlockSpec((tile_b, C), lambda i: (i, 0))],
        out_specs=pl.BlockSpec((tile_b, out_channels), lambda i: (i, 0)),
        scratch_shapes=[
            pltpu.VMEM((tile_b, lane_target), jnp.float32),   # lane-padded input staging
            pltpu.VMEM((pack_rows, tile_b), jnp.float32),     # packed sin/cos arguments
            pltpu.VMEM((out_rows, tile_b), jnp.float32),      # assembled channel-major tile
        ],
        compiler_params=pltpu.CompilerParams(
            dimension_semantics=("parallel",),
            vmem_limit_bytes=vmem_limit,
        ),
    )(xk)

    return out[:B] if pad_b else out


def embedding_reference(x, N_freqs, logscale=False):
    """Plain-JAX reference (mirrors the PyTorch forward)."""
    freq_bands = _make_freq_bands(N_freqs, logscale)
    out = [x]
    for f in freq_bands:
        out.append(jnp.sin(float(f) * x))
        out.append(jnp.cos(float(f) * x))
    return jnp.concatenate(out, axis=-1)


if __name__ == "__main__":
    key = jax.random.PRNGKey(0)
    k0, k1 = jax.random.split(key)

    # xyz-style NeRF embedding: 3 input channels, 4 frequency bands, log-scale.
    B, C, N_freqs = 16, 3, 4
    x = jax.random.normal(k0, (B, C), dtype=jnp.float32)
    out = jax.block_until_ready(embedding_forward(x, N_freqs, logscale=True))
    ref = embedding_reference(x, N_freqs, logscale=True)
    assert out.shape == (B, C * (2 * N_freqs + 1)), out.shape
    np.testing.assert_allclose(np.asarray(out), np.asarray(ref), rtol=1e-5, atol=1e-5)

    # Multi-block path with a partial (masked) last block + non-logscale bands.
    B2 = 200
    x2 = jax.random.normal(k1, (B2, C), dtype=jnp.float32)
    out2 = jax.block_until_ready(embedding_forward(x2, N_freqs, logscale=False))
    ref2 = embedding_reference(x2, N_freqs, logscale=False)
    np.testing.assert_allclose(np.asarray(out2), np.asarray(ref2), rtol=1e-5, atol=1e-5)

    # bf16 output (halves HBM write bytes on this write-bound op).
    out3 = jax.block_until_ready(
        embedding_forward(x2, N_freqs, logscale=True, out_dtype=jnp.bfloat16))
    ref3 = embedding_reference(x2, N_freqs, logscale=True).astype(jnp.bfloat16)
    np.testing.assert_allclose(np.asarray(out3).astype(np.float32),
                               np.asarray(ref3).astype(np.float32),
                               rtol=2e-2, atol=2e-2)

    print("KERNEL_OK")
</pallas_src>

<mosaic_0001>
module attributes {stable_mosaic.version = 11 : i64} {
  func.func @kernel(%arg0: i32, %arg1: memref<128x3xf32, #tpu.memory_space<vmem>>, %arg2: memref<128x27xf32, #tpu.memory_space<vmem>>, %arg3: memref<128x128xf32, #tpu.memory_space<vmem>>, %arg4: memref<16x128xf32, #tpu.memory_space<vmem>>, %arg5: memref<32x128xf32, #tpu.memory_space<vmem>>) attributes {dimension_semantics = [#tpu.dimension_semantics<parallel>], iteration_bounds = array<i64: 1>, scalar_prefetch = 0 : i64, scratch_operands = 3 : i64, tpu.core_type = #tpu.core_type<tc>, window_params = [{transform_indices = @transform_0, window_bounds = array<i64: 128, 3>}, {transform_indices = @transform_1, window_bounds = array<i64: 128, 27>}]} {
    %c0 = arith.constant 0 : index
    %c0_0 = arith.constant 0 : index
    %0 = vector.load %arg1[%c0, %c0_0] : memref<128x3xf32, #tpu.memory_space<vmem>>, vector<128x3xf32>
    %c0_1 = arith.constant 0 : index
    %c0_2 = arith.constant 0 : index
    %1 = vector.load %arg3[%c0_1, %c0_2] : memref<128x128xf32, #tpu.memory_space<vmem>>, vector<128x3xf32>
    tpu.vector_store %arg3[%c0_1, %c0_2], %0 {strides = array<i32>} : memref<128x128xf32, #tpu.memory_space<vmem>>, vector<128x3xf32>,
    %c0_3 = arith.constant 0 : index
    %c0_4 = arith.constant 0 : index
    %2 = vector.load %arg3[%c0_3, %c0_4] : memref<128x128xf32, #tpu.memory_space<vmem>>, vector<128x128xf32>
    %3 = tpu.transpose %2, [1, 0] : vector<128x128xf32> -> vector<128x128xf32>
    %4 = vector.extract_strided_slice %3 {offsets = [0, 0], sizes = [3, 128], strides = [1, 1]} : vector<128x128xf32> to vector<3x128xf32>
    %c0_5 = arith.constant 0 : index
    %c0_6 = arith.constant 0 : index
    %5 = vector.load %arg5[%c0_5, %c0_6] : memref<32x128xf32, #tpu.memory_space<vmem>>, vector<3x128xf32>
    tpu.vector_store %arg5[%c0_5, %c0_6], %4 {strides = array<i32>} : memref<32x128xf32, #tpu.memory_space<vmem>>, vector<3x128xf32>,
    %cst = arith.constant 1.000000e+00 : f32
    %6 = vector.broadcast %cst : f32 to vector<3x128xf32>
    %7 = arith.mulf %6, %4 : vector<3x128xf32>
    %c0_7 = arith.constant 0 : index
    %c0_8 = arith.constant 0 : index
    %8 = vector.load %arg4[%c0_7, %c0_8] : memref<16x128xf32, #tpu.memory_space<vmem>>, vector<3x128xf32>
    tpu.vector_store %arg4[%c0_7, %c0_8], %7 {strides = array<i32>} : memref<16x128xf32, #tpu.memory_space<vmem>>, vector<3x128xf32>,
    %cst_9 = arith.constant 2.000000e+00 : f32
    %9 = vector.broadcast %cst_9 : f32 to vector<3x128xf32>
    %10 = arith.mulf %9, %4 : vector<3x128xf32>
    %c3 = arith.constant 3 : index
    %c0_10 = arith.constant 0 : index
    %11 = vector.load %arg4[%c3, %c0_10] : memref<16x128xf32, #tpu.memory_space<vmem>>, vector<3x128xf32>
    tpu.vector_store %arg4[%c3, %c0_10], %10 {strides = array<i32>} : memref<16x128xf32, #tpu.memory_space<vmem>>, vector<3x128xf32>,
    %cst_11 = arith.constant 4.000000e+00 : f32
    %12 = vector.broadcast %cst_11 : f32 to vector<3x128xf32>
    %13 = arith.mulf %12, %4 : vector<3x128xf32>
    %c6 = arith.constant 6 : index
    %c0_12 = arith.constant 0 : index
    %14 = vector.load %arg4[%c6, %c0_12] : memref<16x128xf32, #tpu.memory_space<vmem>>, vector<3x128xf32>
    tpu.vector_store %arg4[%c6, %c0_12], %13 {strides = array<i32>} : memref<16x128xf32, #tpu.memory_space<vmem>>, vector<3x128xf32>,
    %cst_13 = arith.constant 8.000000e+00 : f32
    %15 = vector.broadcast %cst_13 : f32 to vector<3x128xf32>
    %16 = arith.mulf %15, %4 : vector<3x128xf32>
    %c9 = arith.constant 9 : index
    %c0_14 = arith.constant 0 : index
    %17 = vector.load %arg4[%c9, %c0_14] : memref<16x128xf32, #tpu.memory_space<vmem>>, vector<3x128xf32>
    tpu.vector_store %arg4[%c9, %c0_14], %16 {strides = array<i32>} : memref<16x128xf32, #tpu.memory_space<vmem>>, vector<3x128xf32>,
    %c0_15 = arith.constant 0 : index
    %c0_16 = arith.constant 0 : index
    %18 = vector.load %arg4[%c0_15, %c0_16] : memref<16x128xf32, #tpu.memory_space<vmem>>, vector<16x128xf32>
    %19 = math.sin %18 : vector<16x128xf32>
    %20 = math.cos %18 : vector<16x128xf32>
    %21 = vector.extract_strided_slice %19 {offsets = [0, 0], sizes = [3, 128], strides = [1, 1]} : vector<16x128xf32> to vector<3x128xf32>
    %c3_17 = arith.constant 3 : index
    %c0_18 = arith.constant 0 : index
    %22 = vector.load %arg5[%c3_17, %c0_18] : memref<32x128xf32, #tpu.memory_space<vmem>>, vector<3x128xf32>
    tpu.vector_store %arg5[%c3_17, %c0_18], %21 {strides = array<i32>} : memref<32x128xf32, #tpu.memory_space<vmem>>, vector<3x128xf32>,
    %23 = vector.extract_strided_slice %20 {offsets = [0, 0], sizes = [3, 128], strides = [1, 1]} : vector<16x128xf32> to vector<3x128xf32>
    %c6_19 = arith.constant 6 : index
    %c0_20 = arith.constant 0 : index
    %24 = vector.load %arg5[%c6_19, %c0_20] : memref<32x128xf32, #tpu.memory_space<vmem>>, vector<3x128xf32>
    tpu.vector_store %arg5[%c6_19, %c0_20], %23 {strides = array<i32>} : memref<32x128xf32, #tpu.memory_space<vmem>>, vector<3x128xf32>,
    %25 = vector.extract_strided_slice %19 {offsets = [3, 0], sizes = [3, 128], strides = [1, 1]} : vector<16x128xf32> to vector<3x128xf32>
    %c9_21 = arith.constant 9 : index
    %c0_22 = arith.constant 0 : index
    %26 = vector.load %arg5[%c9_21, %c0_22] : memref<32x128xf32, #tpu.memory_space<vmem>>, vector<3x128xf32>
    tpu.vector_store %arg5[%c9_21, %c0_22], %25 {strides = array<i32>} : memref<32x128xf32, #tpu.memory_space<vmem>>, vector<3x128xf32>,
    %27 = vector.extract_strided_slice %20 {offsets = [3, 0], sizes = [3, 128], strides = [1, 1]} : vector<16x128xf32> to vector<3x128xf32>
    %c12 = arith.constant 12 : index
    %c0_23 = arith.constant 0 : index
    %28 = vector.load %arg5[%c12, %c0_23] : memref<32x128xf32, #tpu.memory_space<vmem>>, vector<3x128xf32>
    tpu.vector_store %arg5[%c12, %c0_23], %27 {strides = array<i32>} : memref<32x128xf32, #tpu.memory_space<vmem>>, vector<3x128xf32>,
    %29 = vector.extract_strided_slice %19 {offsets = [6, 0], sizes = [3, 128], strides = [1, 1]} : vector<16x128xf32> to vector<3x128xf32>
    %c15 = arith.constant 15 : index
    %c0_24 = arith.constant 0 : index
    %30 = vector.load %arg5[%c15, %c0_24] : memref<32x128xf32, #tpu.memory_space<vmem>>, vector<3x128xf32>
    tpu.vector_store %arg5[%c15, %c0_24], %29 {strides = array<i32>} : memref<32x128xf32, #tpu.memory_space<vmem>>, vector<3x128xf32>,
    %31 = vector.extract_strided_slice %20 {offsets = [6, 0], sizes = [3, 128], strides = [1, 1]} : vector<16x128xf32> to vector<3x128xf32>
    %c18 = arith.constant 18 : index
    %c0_25 = arith.constant 0 : index
    %32 = vector.load %arg5[%c18, %c0_25] : memref<32x128xf32, #tpu.memory_space<vmem>>, vector<3x128xf32>
    tpu.vector_store %arg5[%c18, %c0_25], %31 {strides = array<i32>} : memref<32x128xf32, #tpu.memory_space<vmem>>, vector<3x128xf32>,
    %33 = vector.extract_strided_slice %19 {offsets = [9, 0], sizes = [3, 128], strides = [1, 1]} : vector<16x128xf32> to vector<3x128xf32>
    %c21 = arith.constant 21 : index
    %c0_26 = arith.constant 0 : index
    %34 = vector.load %arg5[%c21, %c0_26] : memref<32x128xf32, #tpu.memory_space<vmem>>, vector<3x128xf32>
    tpu.vector_store %arg5[%c21, %c0_26], %33 {strides = array<i32>} : memref<32x128xf32, #tpu.memory_space<vmem>>, vector<3x128xf32>,
    %35 = vector.extract_strided_slice %20 {offsets = [9, 0], sizes = [3, 128], strides = [1, 1]} : vector<16x128xf32> to vector<3x128xf32>
    %c24 = arith.constant 24 : index
    %c0_27 = arith.constant 0 : index
    %36 = vector.load %arg5[%c24, %c0_27] : memref<32x128xf32, #tpu.memory_space<vmem>>, vector<3x128xf32>
    tpu.vector_store %arg5[%c24, %c0_27], %35 {strides = array<i32>} : memref<32x128xf32, #tpu.memory_space<vmem>>, vector<3x128xf32>,
    %c0_28 = arith.constant 0 : index
    %c0_29 = arith.constant 0 : index
    %37 = vector.load %arg5[%c0_28, %c0_29] : memref<32x128xf32, #tpu.memory_space<vmem>>, vector<32x128xf32>
    %38 = tpu.transpose %37, [1, 0] : vector<32x128xf32> -> vector<128x32xf32>
    %39 = vector.extract_strided_slice %38 {offsets = [0, 0], sizes = [128, 27], strides = [1, 1]} : vector<128x32xf32> to vector<128x27xf32>
    %c0_30 = arith.constant 0 : index
    %c0_31 = arith.constant 0 : index
    %40 = vector.load %arg2[%c0_30, %c0_31] : memref<128x27xf32, #tpu.memory_space<vmem>>, vector<128x27xf32>
    tpu.vector_store %arg2[%c0_30, %c0_31], %39 {strides = array<i32>} : memref<128x27xf32, #tpu.memory_space<vmem>>, vector<128x27xf32>,
    return
  }
  func.func @transform_0(%arg0: i32) -> (i32, i32) {
    %c0_i32 = arith.constant 0 : i32
    %c0_i32_0 = arith.constant 0 : i32
    return %arg0, %c0_i32 : i32, i32
  }
  func.func @transform_1(%arg0: i32) -> (i32, i32) {
    %c0_i32 = arith.constant 0 : i32
    %c0_i32_0 = arith.constant 0 : i32
    return %arg0, %c0_i32 : i32, i32
  }
}

</mosaic_0001>

<bundles_post_ra>
// kernel: tpu_custom_call.1
= control target key start
LH: loop header
LB: loop body
LE: loop exit
PB: predicated region body
PF: predicated region fallthrough
CT: control target
= control target key end

     0   :  { %vm24_vm0 = vcmask 23552   ;;  %v619_v58 = vmov 683565275   ;;  %v620_v62 = vmov 2475754826   ;;  %s825_s0 = inlined_call_operand.vmem [shape: f32[128,3], index: 0, kind: input, shape index: {}]   ;;  %s826_s1 = inlined_call_operand.vmem [shape: f32[128,27], index: 1, kind: output, shape index: {}]  }
   0x1   :  { %v8_v0 = vld [vmem:[%s825_s0] sm:$0xff]  ;;  %v9_v1 = vld [vmem:[%s825_s0 + $0x8] sm:$0xff]  ;;  %v10_v2 = vld [vmem:[%s825_s0 + $0x10] sm:$0xff] }
   0x2   :  { %25 = vst.msk [vmem:[#allocation2] sm:$0xff] %vm24_vm0, %v8_v0  ;;  %26 = vst.msk [vmem:[#allocation2 + $0x8] sm:$0xff] %vm24_vm0, %v9_v1  ;;  %v11_v3 = vld [vmem:[%s825_s0 + $0x18] sm:$0xff]  ;;  %v12_v4 = vld [vmem:[%s825_s0 + $0x20] sm:$0xff]  ;;  %v621_v0 = vmov 2131351028  }
   0x3   :  { %27 = vst.msk [vmem:[#allocation2 + $0x10] sm:$0xff] %vm24_vm0, %v10_v2  ;;  %v13_v5 = vld [vmem:[%s825_s0 + $0x28] sm:$0xff]  ;;  %28 = vst.msk [vmem:[#allocation2 + $0x18] sm:$0xff] %vm24_vm0, %v11_v3  ;;  %v14_v6 = vld [vmem:[%s825_s0 + $0x30] sm:$0xff]  ;;  %v622_v2 = vmov 2102212464  }
   0x4   :  { %29 = vst.msk [vmem:[#allocation2 + $0x20] sm:$0xff] %vm24_vm0, %v12_v4  ;;  %30 = vst.msk [vmem:[#allocation2 + $0x28] sm:$0xff] %vm24_vm0, %v13_v5  ;;  %v15_v7 = vld [vmem:[%s825_s0 + $0x38] sm:$0xff]  ;;  %v16_v8 = vld [vmem:[%s825_s0 + $0x40] sm:$0xff]  ;;  %v623_v4 = vmov 920167782  }
   0x5   :  { %31 = vst.msk [vmem:[#allocation2 + $0x30] sm:$0xff] %vm24_vm0, %v14_v6  ;;  %32 = vst.msk [vmem:[#allocation2 + $0x38] sm:$0xff] %vm24_vm0, %v15_v7  ;;  %v17_v9 = vld [vmem:[%s825_s0 + $0x48] sm:$0xff]  ;;  %v18_v10 = vld [vmem:[%s825_s0 + $0x50] sm:$0xff] }
   0x6   :  { %33 = vst.msk [vmem:[#allocation2 + $0x40] sm:$0xff] %vm24_vm0, %v16_v8  ;;  %v19_v11 = vld [vmem:[%s825_s0 + $0x58] sm:$0xff]  ;;  %34 = vst.msk [vmem:[#allocation2 + $0x48] sm:$0xff] %vm24_vm0, %v17_v9  ;;  %v20_v12 = vld [vmem:[%s825_s0 + $0x60] sm:$0xff] }
   0x7   :  { %35 = vst.msk [vmem:[#allocation2 + $0x50] sm:$0xff] %vm24_vm0, %v18_v10  ;;  %36 = vst.msk [vmem:[#allocation2 + $0x58] sm:$0xff] %vm24_vm0, %v19_v11  ;;  %v21_v13 = vld [vmem:[%s825_s0 + $0x68] sm:$0xff]  ;;  %v22_v14 = vld [vmem:[%s825_s0 + $0x70] sm:$0xff]  ;;  %v624_v11 = vmov 1326507024  }
   0x8   :  { %37 = vst.msk [vmem:[#allocation2 + $0x60] sm:$0xff] %vm24_vm0, %v20_v12  ;;  %38 = vst.msk [vmem:[#allocation2 + $0x68] sm:$0xff] %vm24_vm0, %v21_v13  ;;  %v23_v15 = vld [vmem:[%s825_s0 + $0x78] sm:$0xff] }
   0x9   :  { %39 = vst.msk [vmem:[#allocation2 + $0x70] sm:$0xff] %vm24_vm0, %v22_v14  ;;  %40 = vst.msk [vmem:[#allocation2 + $0x78] sm:$0xff] %vm24_vm0, %v23_v15  ;;  %v41_v16 = vld [vmem:[#allocation2] sm:$0xff]  ;;  %v42_v17 = vld [vmem:[#allocation2 + $0x8] sm:$0xff] }
   0xa   :  { %57 = vxpose.xlu0.b32.start [1/16] (narrow) %v41_v16, 8  ;;  %v43_v18 = vld [vmem:[#allocation2 + $0x10] sm:$0xff]  ;;  %v44_v19 = vld [vmem:[#allocation2 + $0x18] sm:$0xff] }
   0xb   :  { %v45_v20 = vld [vmem:[#allocation2 + $0x20] sm:$0xff]  ;;  %v46_v21 = vld [vmem:[#allocation2 + $0x28] sm:$0xff] }
   0xc   :  { %v47_v22 = vld [vmem:[#allocation2 + $0x30] sm:$0xff]  ;;  %v48_v23 = vld [vmem:[#allocation2 + $0x38] sm:$0xff] }
   0xd   :  { %v49_v24 = vld [vmem:[#allocation2 + $0x40] sm:$0xff]  ;;  %v50_v25 = vld [vmem:[#allocation2 + $0x48] sm:$0xff] }
   0xe   :  { %58 = vxpose.xlu0.b32.cont [2/16] (narrow) %v42_v17, 8  ;;  %v51_v26 = vld [vmem:[#allocation2 + $0x50] sm:$0xff]  ;;  %v52_v27 = vld [vmem:[#allocation2 + $0x58] sm:$0xff] }
   0xf   :  { %v53_v28 = vld [vmem:[#allocation2 + $0x60] sm:$0xff]  ;;  %v54_v29 = vld [vmem:[#allocation2 + $0x68] sm:$0xff] }
  0x10   :  { %v55_v30 = vld [vmem:[#allocation2 + $0x70] sm:$0xff]  ;;  %v56_v31 = vld [vmem:[#allocation2 + $0x78] sm:$0xff] }
  0x12   :  { %59 = vxpose.xlu0.b32.cont [3/16] (narrow) %v43_v18, 8 }
  0x16   :  { %60 = vxpose.xlu0.b32.cont [4/16] (narrow) %v44_v19, 8 }
  0x1a   :  { %61 = vxpose.xlu0.b32.cont [5/16] (narrow) %v45_v20, 8 }
  0x1e   :  { %62 = vxpose.xlu0.b32.cont [6/16] (narrow) %v46_v21, 8 }
  0x22   :  { %63 = vxpose.xlu0.b32.cont [7/16] (narrow) %v47_v22, 8 }
  0x26   :  { %64 = vxpose.xlu0.b32.cont [8/16] (narrow) %v48_v23, 8 }
  0x2a   :  { %65 = vxpose.xlu0.b32.cont [9/16] (narrow) %v49_v24, 8 }
  0x2e   :  { %66 = vxpose.xlu0.b32.cont [10/16] (narrow) %v50_v25, 8 }
  0x32   :  { %67 = vxpose.xlu0.b32.cont [11/16] (narrow) %v51_v26, 8 }
  0x36   :  { %68 = vxpose.xlu0.b32.cont [12/16] (narrow) %v52_v27, 8 }
  0x3a   :  { %69 = vxpose.xlu0.b32.cont [13/16] (narrow) %v53_v28, 8 }
  0x3e   :  { %70 = vxpose.xlu0.b32.cont [14/16] (narrow) %v54_v29, 8 }
  0x42   :  { %71 = vxpose.xlu0.b32.cont [15/16] (narrow) %v55_v30, 8 }
  0x46   :  { %72 = vxpose.xlu0.b32.end [16/16] (narrow) %v56_v31, 8 }
  0x8a   :  { %v73_v32 = vpop.trf.xlu0 }
  0x8b   :  { %89 = vst [vmem:[#allocation4] sm:$0x7] %v73_v32  ;;  %90 = vst [vmem:[#allocation3] sm:$0x7] %v73_v32  ;;  %v91_v33 = vmul.f32 2.0, %v73_v32  ;;  %v93_v34 = vmul.f32 4.0, %v73_v32 }
  0x8c   :  { %v95_v35 = vmul.f32 8.0, %v73_v32 }
  0x8d   :  { %92 = vst [vmem:[#allocation3 + $0x3] sm:$0x7] %v91_v33  ;;  %94 = vst [vmem:[#allocation3 + $0x6] sm:$0x7] %v93_v34 }
  0x8e   :  { %96 = vst [vmem:[#allocation3 + $0x9] sm:$0x7] %v95_v35 }
  0x94   :  { %v699_v36 = vld [vmem:[#allocation3] sm:$0xff] }
  0x95   :  { %v701_v37 = vld [vmem:[#allocation3 + $0x8] sm:$0xff]  ;;  %v99_v38 = vand.u32 2147483647, %v699_v36  ;;  %v102_v39 = vand.u32 2139095040, %v699_v36  ;;  %vm101_vm15 = vcmp.lt.s32.totalorder %v699_v36, 0 }
  0x96   :  { %v206_v40 = vand.u32 2139095040, %v701_v37  ;;  %v203_v43 = vand.u32 2147483647, %v701_v37 }
  0x97   :  { %v103_v41 = vshrl.u32 %v102_v39, 23  ;;  %v106_v42 = vand.u32 8388607, %v99_v38  ;;  %vm100_vm0 = vcmp.le.f32.partialorder %v99_v38, 0.7853982 }
  0x98   :  { %v207_v44 = vshrl.u32 %v206_v40, 23  ;;  %v711_v49 = vand.u32 8388607, %v203_v43 }
  0x99   :  { %v580_v45 = vadd.s32 4294967169, %v103_v41  ;;  %v107_v48 = vor.u32 8388608, %v106_v42 }
  0x9a   :  { %v584_v46 = vadd.s32 4294967169, %v207_v44  ;;  %v211_v56 = vor.u32 8388608, %v711_v49 }
  0x9b   :  { %v109_v47 = vadd.s32 1, %v580_v45  ;;  %v713_v55 = vshll.u32 %v107_v48, 8 }
  0x9c   :  { %v213_v50 = vadd.s32 1, %v584_v46 }
  0x9d   :  { %vm110_vm1 = vcmp.gt.s32.totalorder %v109_v47, 0 }
  0x9e   :  { %v111_v51 = vsel %vm110_vm1, %v109_v47, 0  ;;  %vm214_vm2 = vcmp.gt.s32.totalorder %v213_v50, 0  ;;  %vm205_vm1 = vcmp.lt.s32.totalorder %v701_v37, 0 }
  0x9f   :  { %v112_v52 = vshrl.u32 %v111_v51, 5  ;;  %v113_v53 = vand.u32 31, %v111_v51  ;;  %v215_v54 = vsel %vm214_vm2, %v213_v50, 0  ;;  %v251_v50 = vshll.u32 %v211_v56, 8 }
  0xa0   :  { %v716_v60 = vshrl.u32 %v215_v54, 5  ;;  %v217_v61 = vand.u32 31, %v215_v54  ;;  %vm204_vm2 = vcmp.le.f32.partialorder %v203_v43, 0.7853982 }
  0xa1   :  { %v114_v57 = vsub.s32 32, %v113_v53  ;;  %v116_v59 = vshll.u32 %v619_v58, %v113_v53  ;;  %v119_v63 = vshll.u32 %v620_v62, %v113_v53  ;;  %v122_v1 = vshll.u32 %v621_v0, %v113_v53 }
  0xa2   :  { %v125_v3 = vshll.u32 %v622_v2, %v113_v53  ;;  %v128_v5 = vshll.u32 %v623_v4, %v113_v53  ;;  %vm131_vm3 = vcmp.lt.s32.totalorder %v112_v52, 1  ;;  %vm132_vm4 = vcmp.lt.s32.totalorder %v112_v52, 2 }
  0xa3   :  { %v117_v6 = vshrl.u32 %v620_v62, %v114_v57  ;;  %v120_v7 = vshrl.u32 %v621_v0, %v114_v57  ;;  %v123_v8 = vshrl.u32 %v622_v2, %v114_v57  ;;  %v115_v9 = vshrl.u32 %v619_v58, %v114_v57 }
  0xa4   :  { %v126_v10 = vshrl.u32 %v623_v4, %v114_v57  ;;  %v129_v12 = vshrl.u32 %v624_v11, %v114_v57  ;;  %v218_v16 = vsub.s32 32, %v217_v61  ;;  %vm133_vm5 = vcmp.lt.s32.totalorder %v112_v52, 3 }
  0xa5   :  { %v118_v13 = vor.u32 %v117_v6, %v116_v59  ;;  %v121_v14 = vor.u32 %v120_v7, %v119_v63  ;;  %v124_v15 = vor.u32 %v123_v8, %v122_v1  ;;  %vm134_vm6 = vcmp.lt.s32.totalorder %v112_v52, 4 }
  0xa6   :  { %v127_v17 = vor.u32 %v126_v10, %v125_v3  ;;  %v130_v18 = vor.u32 %v129_v12, %v128_v5  ;;  %v220_v26 = vshll.u32 %v619_v58, %v217_v61  ;;  %v221_v29 = vshrl.u32 %v620_v62, %v218_v16 }
  0xa7   :  { %v135_v19 = vsel %vm131_vm3, %v115_v9, %v118_v13  ;;  %v136_v20 = vsel %vm134_vm6, %v124_v15, 2102212464  ;;  %v139_v21 = vsel %vm131_vm3, %v118_v13, %v121_v14  ;;  %v143_v22 = vsel %vm131_vm3, %v121_v14, %v124_v15 }
  0xa8   :  { %v137_v23 = vsel %vm133_vm5, %v121_v14, %v136_v20  ;;  %v140_v24 = vsel %vm134_vm6, %v127_v17, 920167782  ;;  %v144_v25 = vsel %vm134_vm6, %v130_v18, 1326507024  ;;  %v223_v30 = vshll.u32 %v620_v62, %v217_v61 }
  0xa9   :  { %v141_v27 = vsel %vm133_vm5, %v124_v15, %v140_v24  ;;  %v145_v28 = vsel %vm133_vm5, %v127_v17, %v144_v25  ;;  %v138_v31 = vsel %vm132_vm4, %v135_v19, %v137_v23  ;;  %v224_v34 = vshrl.u32 %v621_v0, %v218_v16 }
  0xaa   :  { %v142_v32 = vsel %vm132_vm4, %v139_v21, %v141_v27  ;;  %v146_v33 = vsel %vm132_vm4, %v143_v22, %v145_v28  ;;  %v222_v42 = vor.u32 %v221_v29, %v220_v26  ;;  %v226_v45 = vshll.u32 %v621_v0, %v217_v61 }
  0xab   :  { %v725_v35 = vmul.u32.u64.low %v713_v55, %v146_v33  ;;  %v726_v39 = vmul.u32.u64.high %v713_v55, %v146_v33, %v725_v35  ;;  %v729_v40 = vmul.u32.u64.low %v713_v55, %v142_v32  ;;  %v730_v41 = vmul.u32.u64.high %v713_v55, %v142_v32, %v729_v40 }
  0xac   :  { %v225_v44 = vor.u32 %v224_v34, %v223_v30  ;;  %v227_v46 = vshrl.u32 %v622_v2, %v218_v16  ;;  %v229_v47 = vshll.u32 %v622_v2, %v217_v61  ;;  %v230_v48 = vshrl.u32 %v623_v4, %v218_v16 }
  0xad   :  { %v233_v49 = vshrl.u32 %v624_v11, %v218_v16  ;;  %v154_v51 = vmul.u32 %v713_v55, %v138_v31  ;;  %v219_v52 = vshrl.u32 %v619_v58, %v218_v16  ;;  %v232_v54 = vshll.u32 %v623_v4, %v217_v61 }
  0xae   :  { %v228_v53 = vor.u32 %v227_v46, %v226_v45  ;;  %vm156_vm7 = vc.u32 %v726_v39, %v729_v40  ;;  %v157_v57 = vadd.s32 1, %v730_v41  ;;  %v231_v59 = vor.u32 %v230_v48, %v229_v47 }
  0xaf   :  { %vm235_vm8 = vcmp.lt.s32.totalorder %v716_v60, 1  ;;  %v234_v62 = vor.u32 %v233_v49, %v232_v54  ;;  %vm237_vm9 = vcmp.lt.s32.totalorder %v716_v60, 3  ;;  %vm238_vm10 = vcmp.lt.s32.totalorder %v716_v60, 4 }
  0xb0   :  { %v243_v63 = vsel %vm235_vm8, %v222_v42, %v225_v44  ;;  %v158_v56 = vsel %vm156_vm7, %v157_v57, %v730_v41  ;;  %v240_v0 = vsel %vm238_vm10, %v228_v53, 2102212464  ;;  %v244_v55 = vsel %vm238_vm10, %v231_v59, 920167782 }
  0xb1   :  { %v247_v58 = vsel %vm235_vm8, %v225_v44, %v228_v53  ;;  %v159_v1 = vadd.s32 %v158_v56, %v154_v51  ;;  %vm236_vm11 = vcmp.lt.s32.totalorder %v716_v60, 2  ;;  %v245_v61 = vsel %vm237_vm9, %v228_v53, %v244_v55 }
  0xb2   :  { %v248_v2 = vsel %vm238_vm10, %v234_v62, 1326507024  ;;  %v239_v3 = vsel %vm235_vm8, %v219_v52, %v222_v42  ;;  %v241_v4 = vsel %vm237_vm9, %v225_v44, %v240_v0  ;;  %v246_v5 = vsel %vm236_vm11, %v243_v63, %v245_v61 }
  0xb3   :  { %v249_v6 = vsel %vm237_vm9, %v231_v59, %v248_v2  ;;  %v160_v7 = vadd.s32 536870912, %v159_v1  ;;  %v740_v9 = vmul.u32.u64.low %v251_v50, %v246_v5  ;;  %v741_v10 = vmul.u32.u64.high %v251_v50, %v246_v5, %v740_v9 }
  0xb4   :  { %v250_v8 = vsel %vm236_vm11, %v247_v58, %v249_v6  ;;  %v242_v14 = vsel %vm236_vm11, %v239_v3, %v241_v4  ;;  %v155_v30 = vadd.s32 %v729_v40, %v726_v39  ;;  %vm191_vm9 = vweird.f32 %v699_v36 }
  0xb5   :  { %v743_v11 = vmul.u32.u64.low %v251_v50, %v250_v8  ;;  %v744_v12 = vmul.u32.u64.high %v251_v50, %v250_v8, %v743_v11  ;;  %v161_v13 = vshrl.u32 %v160_v7, 30  ;;  %v261_v16 = vadd.s32 1, %v741_v10 }
  0xb6   :  { %v258_v60 = vmul.u32 %v251_v50, %v242_v14 }
  0xb7   :  { %v162_v15 = vshll.u32 %v161_v13, 30  ;;  %vm260_vm12 = vc.u32 %v744_v12, %v740_v9  ;;  %v259_v51 = vadd.s32 %v740_v9, %v744_v12  ;;  %v185_v40 = vsub.s32 4, %v161_v13 }
  0xb8   :  { %v262_v18 = vsel %vm260_vm12, %v261_v16, %v741_v10 }
  0xb9   :  { %v163_v17 = vsub.s32 %v159_v1, %v162_v15  ;;  %v263_v19 = vadd.s32 %v262_v18, %v258_v60  ;;  %v186_v55 = vsel %vm101_vm15, %v185_v40, %v161_v13 }
  0xba   :  { %v188_v3 = vsel %vm100_vm0, 0, %v186_v55 }
  0xbb   :  { %v165_v20 = vsub.s32 0, %v163_v17  ;;  %v264_v21 = vadd.s32 536870912, %v263_v19  ;;  %v192_v6 = vadd.s32 3, %v188_v3  ;;  %v400_v10 = vand.u32 3, %v188_v3 }
  0xbd   :  { %v581_v22 = vmin.u32 %v165_v20, %v163_v17  ;;  %v265_v23 = vshrl.u32 %v264_v21, 30  ;;  %v193_v9 = vand.u32 3, %v192_v6  ;;  %vm402_vm4 = vcmp.eq.s32.totalorder %v400_v10, 0 }
  0xbe   :  { %vm405_vm5 = vcmp.eq.s32.totalorder %v400_v10, 2  ;;  %vm401_vm8 = vcmp.lt.s32.totalorder %v400_v10, 2 }
  0xbf   :  { %v167_v24 = vclz %v581_v22  ;;  %v266_v25 = vshll.u32 %v265_v23, 30  ;;  %v289_v5 = vsub.s32 4, %v265_v23  ;;  %vm198_vm3 = vcmp.eq.s32.totalorder %v193_v9, 2 }
  0xc0   :  { %vm195_vm6 = vcmp.eq.s32.totalorder %v193_v9, 0  ;;  %vm194_vm7 = vcmp.lt.s32.totalorder %v193_v9, 2 }
  0xc1   :  { %v582_v26 = vadd.s32 4294967294, %v167_v24  ;;  %v267_v27 = vsub.s32 %v263_v19, %v266_v25  ;;  %v290_v38 = vsel %vm205_vm1, %v289_v5, %v265_v23 }
  0xc2   :  { %v292_v13 = vsel %vm204_vm2, 0, %v290_v38 }
  0xc3   :  { %vm583_vm13 = vcmp.lt.s32.totalorder %v582_v26, 0  ;;  %v269_v29 = vsub.s32 0, %v267_v27  ;;  %v296_v18 = vadd.s32 3, %v292_v13  ;;  %v503_v25 = vand.u32 3, %v292_v13 }
  0xc4   :  { %v170_v28 = vsel %vm583_vm13, 0, %v582_v26 }
  0xc5   :  { %v171_v31 = vsub.s32 32, %v170_v28  ;;  %v175_v32 = vsub.s32 4294967266, %v170_v28  ;;  %v585_v33 = vmin.u32 %v269_v29, %v267_v27  ;;  %v172_v34 = vshll.u32 %v163_v17, %v170_v28 }
  0xc6   :  { %v297_v24 = vand.u32 3, %v296_v18  ;;  %vm508_vm11 = vcmp.eq.s32.totalorder %v503_v25, 2  ;;  %vm505_vm13 = vcmp.eq.s32.totalorder %v503_v25, 0 }
  0xc7   :  { %v173_v35 = vshrl.u32 %v155_v30, %v171_v31  ;;  %v176_v41 = vadd.s32 127, %v175_v32  ;;  %v271_v42 = vclz %v585_v33 }
  0xc8   :  { %vm302_vm10 = vcmp.eq.s32.totalorder %v297_v24, 2  ;;  %vm299_vm12 = vcmp.eq.s32.totalorder %v297_v24, 0 }
  0xc9   :  { %v174_v44 = vor.u32 %v173_v35, %v172_v34  ;;  %v177_v45 = vshll.u32 %v176_v41, 23  ;;  %v586_v46 = vadd.s32 4294967294, %v271_v42 }
  0xcb   :  { %v178_v47 = vor.u32 4788187, %v177_v45  ;;  %vm587_vm14 = vcmp.lt.s32.totalorder %v586_v46, 0  ;;  %v181_v49 = vcvt.s32.f32 %v174_v44 }
  0xcc   :  { %v274_v50 = vsel %vm587_vm14, 0, %v586_v46  ;;  %vm298_vm14 = vcmp.lt.s32.totalorder %v297_v24, 2 }
  0xcd   :  { %v179_v48 = vand.u32 2147483647, %v178_v47  ;;  %v275_v52 = vsub.s32 32, %v274_v50  ;;  %v279_v53 = vsub.s32 4294967266, %v274_v50  ;;  %v276_v54 = vshll.u32 %v267_v27, %v274_v50 }
  0xcf   :  { %v182_v39 = vmul.f32 %v181_v49, %v179_v48  ;;  %v277_v57 = vshrl.u32 %v259_v51, %v275_v52  ;;  %v280_v59 = vadd.s32 127, %v279_v53 }
  0xd1   :  { %v183_v62 = vxor.u32 2147483648, %v182_v39  ;;  %v278_v63 = vor.u32 %v277_v57, %v276_v54  ;;  %v281_v56 = vshll.u32 %v280_v59, 23 }
  0xd3   :  { %v184_v0 = vsel %vm101_vm15, %v183_v62, %v182_v39  ;;  %v282_v58 = vor.u32 4788187, %v281_v56  ;;  %v285_v2 = vcvt.s32.f32 %v278_v63  ;;  %vm504_vm15 = vcmp.lt.s32.totalorder %v503_v25, 2 }
  0xd4   :  { %v187_v1 = vsel %vm100_vm0, %v699_v36, %v184_v0  ;;  %vm295_vm0 = vweird.f32 %v701_v37 }
  0xd5   :  { %611 = vcosq.f32 %v187_v1  ;;  %v283_v61 = vand.u32 2147483647, %v282_v58 }
  0xd6   :  { %613 = vsinq.f32 %v187_v1 }
  0xd7   :  { %v286_v4 = vmul.f32 %v285_v2, %v283_v61 }
  0xd9   :  { %v287_v7 = vxor.u32 2147483648, %v286_v4 }
  0xdb   :  { %v288_v8 = vsel %vm205_vm1, %v287_v7, %v286_v4  ;;  %vm559_vm1 = vcmask 220160  }
  0xdc   :  { %v291_v11 = vsel %vm204_vm2, %v701_v37, %v288_v8 }
  0xdd   :  { %615 = vcosq.f32 %v291_v11 }
  0xde   :  { %617 = vsinq.f32 %v291_v11 }
  0xdf   :  { %v612_v12 = vpop.eup %611 }
  0xe0   :  { %v614_v14 = vpop.eup %613  ;;  %v199_v15 = vxor.u32 2147483648, %v612_v12 }
  0xe1   :  { %v196_v16 = vxor.u32 2147483648, %v614_v14 }
  0xe2   :  { %v200_v60 = vsel %vm198_vm3, %v199_v15, %v614_v14  ;;  %v407_v17 = vsel %vm405_vm5, %v199_v15, %v614_v14 }
  0xe3   :  { %v197_v43 = vsel %vm195_vm6, %v612_v12, %v196_v16  ;;  %v404_v19 = vsel %vm402_vm4, %v612_v12, %v196_v16 }
  0xe4   :  { %v201_v20 = vsel %vm194_vm7, %v197_v43, %v200_v60  ;;  %v408_v21 = vsel %vm401_vm8, %v404_v19, %v407_v17 }
  0xe5   :  { %v202_v22 = vsel %vm191_vm9, nan, %v201_v20  ;;  %v409_v23 = vsel %vm191_vm9, nan, %v408_v21 }
  0xe6   :  { %513 = vst [vmem:[#allocation4 + $0x3] ss:$10 sps:$4 sm:$0xc7] %v202_v22   ;;  %514 = vst [vmem:[#allocation4 + $0x6] ss:$10 sps:$4 sm:$0xc7] %v409_v23  }
  0xe7   :  { %515 = vst [vmem:[#allocation4 + $0x6] sm:$0x38] %v202_v22  ;;  %516 = vst [vmem:[#allocation4 + $0x9] sm:$0x38] %v409_v23  ;;  %v616_v26 = vpop.eup %615 }
  0xe8   :  { %v618_v27 = vpop.eup %617  ;;  %v303_v28 = vxor.u32 2147483648, %v616_v26 }
  0xe9   :  { %v300_v29 = vxor.u32 2147483648, %v618_v27 }
  0xea   :  { %v304_v30 = vsel %vm302_vm10, %v303_v28, %v618_v27  ;;  %v510_v36 = vsel %vm508_vm11, %v303_v28, %v618_v27 }
  0xeb   :  { %v301_v31 = vsel %vm299_vm12, %v616_v26, %v300_v29  ;;  %v507_v32 = vsel %vm505_vm13, %v616_v26, %v300_v29 }
  0xec   :  { %v305_v34 = vsel %vm298_vm14, %v301_v31, %v304_v30  ;;  %v511_v35 = vsel %vm504_vm15, %v507_v32, %v510_v36 }
  0xed   :  { %v523_v33 = vld [vmem:[#allocation4] sm:$0xff]  ;;  %v306_v41 = vsel %vm295_vm0, nan, %v305_v34  ;;  %v512_v42 = vsel %vm295_vm0, nan, %v511_v35 }
  0xee   :  { %527 = vxpose.xlu1.b32.start [1/4] (short) %v523_v33, 128  ;;  %518 = vst [vmem:[#allocation4 + $0x11] sm:$0x1] %v306_v41  ;;  %520 = vst [vmem:[#allocation4 + $0x14] sm:$0x1] %v512_v42  ;;  %v524_v44 = vld [vmem:[#allocation4 + $0x8] sm:$0xff] }
  0xef   :  { %521 = vst [vmem:[#allocation4 + $0x14] sm:$0xe] %v306_v41  ;;  %522 = vst [vmem:[#allocation4 + $0x17] sm:$0xe] %v512_v42 }
  0xf2   :  { %528 = vxpose.xlu1.b32.cont [2/4] (short) %v524_v44, 128 }
  0xf6   :  { %v525_v45 = vld [vmem:[#allocation4 + $0x10] sm:$0xff]  ;;  %v526_v46 = vld [vmem:[#allocation4 + $0x18] sm:$0xff] }
  0xf7   :  { %529 = vxpose.xlu1.b32.cont [3/4] (short) %v525_v45, 128 }
  0xfb   :  { %530 = vxpose.xlu1.b32.end [4/4] (short) %v526_v46, 128 }
 0x16f   :  { %v543_v47 = vpop.trf.xlu1 }
 0x170   :  { %560 = vst.msk [vmem:[%s826_s1] sm:$0xff] %vm559_vm1, %v543_v47 }
 0x173   :  { %v544_v37 = vpop.trf.xlu1 }
 0x174   :  { %561 = vst.msk [vmem:[%s826_s1 + $0x8] sm:$0xff] %vm559_vm1, %v544_v37 }
 0x177   :  { %v545_v48 = vpop.trf.xlu1 }
 0x178   :  { %562 = vst.msk [vmem:[%s826_s1 + $0x10] sm:$0xff] %vm559_vm1, %v545_v48 }
 0x17b   :  { %v546_v49 = vpop.trf.xlu1 }
 0x17c   :  { %563 = vst.msk [vmem:[%s826_s1 + $0x18] sm:$0xff] %vm559_vm1, %v546_v49 }
 0x17f   :  { %v547_v50 = vpop.trf.xlu1 }
 0x180   :  { %564 = vst.msk [vmem:[%s826_s1 + $0x20] sm:$0xff] %vm559_vm1, %v547_v50 }
 0x183   :  { %v548_v51 = vpop.trf.xlu1 }
 0x184   :  { %565 = vst.msk [vmem:[%s826_s1 + $0x28] sm:$0xff] %vm559_vm1, %v548_v51 }
 0x187   :  { %v549_v52 = vpop.trf.xlu1 }
 0x188   :  { %566 = vst.msk [vmem:[%s826_s1 + $0x30] sm:$0xff] %vm559_vm1, %v549_v52 }
 0x18b   :  { %v550_v53 = vpop.trf.xlu1 }
 0x18c   :  { %567 = vst.msk [vmem:[%s826_s1 + $0x38] sm:$0xff] %vm559_vm1, %v550_v53 }
 0x18f   :  { %v551_v39 = vpop.trf.xlu1 }
 0x190   :  { %568 = vst.msk [vmem:[%s826_s1 + $0x40] sm:$0xff] %vm559_vm1, %v551_v39 }
 0x193   :  { %v552_v40 = vpop.trf.xlu1 }
 0x194   :  { %569 = vst.msk [vmem:[%s826_s1 + $0x48] sm:$0xff] %vm559_vm1, %v552_v40 }
 0x197   :  { %v553_v54 = vpop.trf.xlu1 }
 0x198   :  { %570 = vst.msk [vmem:[%s826_s1 + $0x50] sm:$0xff] %vm559_vm1, %v553_v54 }
 0x19b   :  { %v554_v57 = vpop.trf.xlu1 }
 0x19c   :  { %571 = vst.msk [vmem:[%s826_s1 + $0x58] sm:$0xff] %vm559_vm1, %v554_v57 }
 0x19f   :  { %v555_v59 = vpop.trf.xlu1 }
 0x1a0   :  { %572 = vst.msk [vmem:[%s826_s1 + $0x60] sm:$0xff] %vm559_vm1, %v555_v59 }
 0x1a3   :  { %v556_v62 = vpop.trf.xlu1 }
 0x1a4   :  { %573 = vst.msk [vmem:[%s826_s1 + $0x68] sm:$0xff] %vm559_vm1, %v556_v62 }
 0x1a7   :  { %v557_v63 = vpop.trf.xlu1 }
 0x1a8   :  { %574 = vst.msk [vmem:[%s826_s1 + $0x70] sm:$0xff] %vm559_vm1, %v557_v63 }
 0x1ab   :  { %v558_v56 = vpop.trf.xlu1 }
 0x1ac   :  { %575 = vst.msk [vmem:[%s826_s1 + $0x78] sm:$0xff] %vm559_vm1, %v558_v56 }

</bundles_post_ra>
